<compile_context>
chip_gen: v6e
topology: v6e:2x2x1
jax: 0.10.0
libtpu: 0.0.40
codegen_flags: <defaults>
</compile_context>

<pallas_src>
import math
import functools

import numpy as np
import jax
import jax.numpy as jnp
from jax.experimental import pallas as pl
from jax.experimental.pallas import tpu as pltpu


# ---------------------------------------------------------------------------
# Deterministic parameter construction (mirrors LSTM_Cell.__init__).
# ---------------------------------------------------------------------------
def ortho_weight(ndim, rng):
    W = rng.randn(ndim, ndim)
    u, _, _ = np.linalg.svd(W)
    return u.astype("float32")


def make_params(in_dim, mem_dim, seed=0):
    # The PyTorch module only runs when in_dim == mem_dim.
    assert in_dim == mem_dim
    rng = np.random.RandomState(seed)

    # Hidden-to-hidden gates (Linear(mem, mem, bias=False)), weight = ortho.
    W_ih = ortho_weight(mem_dim, rng)
    W_fh = ortho_weight(mem_dim, rng)
    W_oh = ortho_weight(mem_dim, rng)
    W_ch = ortho_weight(mem_dim, rng)

    # Input-to-hidden gates (Linear(in, mem) with bias), weight = ortho,
    # bias keeps nn.Linear's default U(-1/sqrt(in), 1/sqrt(in)) init.
    bound = 1.0 / math.sqrt(in_dim)

    def new_W():
        W = ortho_weight(mem_dim, rng)
        b = rng.uniform(-bound, bound, size=(mem_dim,)).astype("float32")
        return W, b

    W_cx, b_cx = new_W()
    W_ox, b_ox = new_W()
    W_fx, b_fx = new_W()
    W_ix, b_ix = new_W()

    # nn.Linear computes x @ W.T + b; pre-transpose so kernels do x @ Wx.
    # Gate order in the fused matrices: [u(c), i, f, o].
    Wx = np.concatenate([W_cx.T, W_ix.T, W_fx.T, W_ox.T], axis=1)  # (in, 4*mem)
    Wh = np.concatenate([W_ch.T, W_ih.T, W_fh.T, W_oh.T], axis=1)  # (mem, 4*mem)
    b = np.concatenate([b_cx, b_ix, b_fx, b_ox])                   # (4*mem,)
    return jnp.asarray(Wx), jnp.asarray(Wh), jnp.asarray(b)


# ---------------------------------------------------------------------------
# Padding helpers (lane/sublane-dense tiles, gate bands 128-aligned).
# ---------------------------------------------------------------------------
def _round_up(n, m):
    return (n + m - 1) // m * m


def _pad_gate_banded(W, H, Hp):
    """(..., 4H) -> (..., 4Hp): each gate's H columns padded to an Hp-wide band."""
    if H == Hp:
        return W
    pad = [(0, 0)] * (W.ndim - 1) + [(0, Hp - H)]
    parts = [jnp.pad(W[..., g * H:(g + 1) * H], pad) for g in range(4)]
    return jnp.concatenate(parts, axis=-1)


# ---------------------------------------------------------------------------
# Stage 1: input projection for all time-steps at once (big MXU matmul).
# x stays f32 in HBM; the bf16 MXU cast is free VPU work inside the kernel.
# Output xg is stored bf16 to halve stage-2's HBM read.
# ---------------------------------------------------------------------------
def _proj_kernel(x_ref, wx_ref, b_ref, out_ref):
    x = x_ref[...].astype(jnp.bfloat16)
    acc = jnp.dot(x, wx_ref[...], preferred_element_type=jnp.float32)
    out_ref[...] = (acc + b_ref[...]).astype(out_ref.dtype)


# ---------------------------------------------------------------------------
# Stage 2: sequential recurrence, T time-steps per grid iteration.
# Grid = (batch_blocks, time_blocks); h/c carries live in VMEM scratch that
# persists across the (inner, "arbitrary") time axis and is re-initialized at
# the start of each batch block's time sweep.
# ---------------------------------------------------------------------------
def _lstm_recurrent_kernel(T, xg_ref, mask_ref, wh_ref, out_ref, h_scr, c_scr):
    @pl.when(pl.program_id(1) == 0)
    def _():
        h_scr[...] = jnp.zeros_like(h_scr)
        c_scr[...] = jnp.zeros_like(c_scr)

    Hp = h_scr.shape[-1]

    def step(i, carry):
        h, c = carry
        # Only the hidden-to-hidden matmul remains on the sequential path;
        # x @ Wx + b was precomputed (bf16) in xg_ref. bf16 MXU, f32 accumulate.
        gates = xg_ref[i].astype(jnp.float32) + jnp.dot(
            h.astype(jnp.bfloat16), wh_ref[...],
            preferred_element_type=jnp.float32)

        # Gate bands are 128-aligned (Hp multiple of 128) -> lane-aligned slices.
        u = jnp.tanh(gates[:, 0 * Hp:1 * Hp])
        gi = jax.nn.sigmoid(gates[:, 1 * Hp:2 * Hp])
        gf = jax.nn.sigmoid(gates[:, 2 * Hp:3 * Hp])
        go = jax.nn.sigmoid(gates[:, 3 * Hp:4 * Hp])

        c_new = gi * u + gf * c
        h_new = go * jnp.tanh(c_new)

        # Mask-gated carry (binary mask) via select, f32.
        keep = mask_ref[i] != 0.0            # (Bb, 1)
        h = jnp.where(keep, h_new, h)
        c = jnp.where(keep, c_new, c)

        out_ref[i] = h
        return (h, c)

    h, c = jax.lax.fori_loop(0, T, step, (h_scr[...], c_scr[...]),
                             unroll=min(T, 8))
    h_scr[...] = h
    c_scr[...] = c


# ---------------------------------------------------------------------------
# Wrapper
# ---------------------------------------------------------------------------
def lstm_forward(x, x_mask, Wx, Wh, b, *, block_T=16, block_B=None):
    """x: (S, B, D) f32, x_mask: (S, B) f32. Returns (S, B, H) hidden states."""
    S, B, D = x.shape
    H = Wh.shape[0]
    T = block_T

    Bp = _round_up(B, 16)       # bf16 packs 16 rows / vreg -> dense MXU lhs
    Hp = _round_up(H, 128)      # lane multiple (gate bands lane-aligned)
    Dp = _round_up(D, 128)
    Sp = _round_up(S, T)
    Bb = Bp if block_B is None else block_B
    assert Bp % Bb == 0 and Bb % 16 == 0

    # ---- pad inputs (padded steps/rows get mask=0 -> carries unchanged) ----
    x_p = jnp.pad(x.astype(jnp.float32), ((0, Sp - S), (0, Bp - B), (0, Dp - D)))
    m_p = jnp.pad(x_mask.astype(jnp.float32),
                  ((0, Sp - S), (0, Bp - B)))[:, :, None]          # (Sp, Bp, 1)

    # ---- pad + cast parameters (bf16 MXU inputs, f32 bias) ----
    Wx_p = jnp.pad(_pad_gate_banded(Wx, H, Hp),
                   ((0, Dp - D), (0, 0))).astype(jnp.bfloat16)     # (Dp, 4Hp)
    Wh_p = jnp.pad(_pad_gate_banded(Wh, H, Hp),
                   ((0, Hp - H), (0, 0))).astype(jnp.bfloat16)     # (Hp, 4Hp)
    b_p = _pad_gate_banded(b.reshape(1, 4 * H), H, Hp).astype(jnp.float32)  # (1, 4Hp)

    # ---- Stage 1: xg[s, b, :] = x[s, b, :] @ Wx + b for all steps at once ----
    total_rows = Sp * Bp
    RM = min(512, total_rows)                 # big MXU-shaped row tile
    Rp = _round_up(total_rows, RM)
    x2d = x_p.reshape(total_rows, Dp)         # stays f32; cast happens in-kernel
    if Rp > total_rows:
        x2d = jnp.pad(x2d, ((0, Rp - total_rows), (0, 0)))

    vmem1 = (2 * RM * Dp * 4                  # x block f32, double-buffered
             + Dp * 4 * Hp * 2                # Wx bf16, Buffered(1)
             + 2 * 4 * Hp * 4                 # bias
             + 2 * RM * 4 * Hp * 2)           # xg block bf16, double-buffered
    vmem1 = int(vmem1 * 1.5) + (4 << 20)

    xg = pl.pallas_call(
        _proj_kernel,
        out_shape=jax.ShapeDtypeStruct((Rp, 4 * Hp), jnp.bfloat16),
        grid_spec=pltpu.PrefetchScalarGridSpec(
            num_scalar_prefetch=0,
            grid=(Rp // RM,),
            in_specs=[
                pl.BlockSpec((RM, Dp), lambda r: (r, 0)),            # x rows
                pl.BlockSpec((Dp, 4 * Hp), lambda r: (0, 0),
                             pipeline_mode=pl.Buffered(1)),          # Wx resident
                pl.BlockSpec((1, 4 * Hp), lambda r: (0, 0),
                             pipeline_mode=pl.Buffered(1)),          # bias resident
            ],
            out_specs=pl.BlockSpec((RM, 4 * Hp), lambda r: (r, 0)),
        ),
        compiler_params=pltpu.CompilerParams(
            dimension_semantics=("parallel",),
            vmem_limit_bytes=vmem1),
    )(x2d, Wx_p, b_p)
    xg = xg[:total_rows].reshape(Sp, Bp, 4 * Hp)

    # ---- Stage 2: recurrence over time, T steps per grid iteration ----
    vmem2 = (2 * T * Bb * 4 * Hp * 2          # xg block bf16, double-buffered
             + 2 * T * Bb * 4                 # mask block
             + Hp * 4 * Hp * 2                # Wh bf16, Buffered(1)
             + 2 * T * Bb * Hp * 4            # out block f32, double-buffered
             + 2 * Bb * Hp * 4)               # h/c carries
    vmem2 = int(vmem2 * 1.5) + (4 << 20)

    out = pl.pallas_call(
        functools.partial(_lstm_recurrent_kernel, T),
        out_shape=jax.ShapeDtypeStruct((Sp, Bp, Hp), jnp.float32),
        grid_spec=pltpu.PrefetchScalarGridSpec(
            num_scalar_prefetch=0,
            grid=(Bp // Bb, Sp // T),          # (batch blocks, time blocks)
            in_specs=[
                pl.BlockSpec((T, Bb, 4 * Hp), lambda bb, t: (t, bb, 0)),   # gates
                pl.BlockSpec((T, Bb, 1), lambda bb, t: (t, bb, 0)),        # mask
                pl.BlockSpec((Hp, 4 * Hp), lambda bb, t: (0, 0),
                             pipeline_mode=pl.Buffered(1)),                # Wh resident
            ],
            out_specs=pl.BlockSpec((T, Bb, Hp), lambda bb, t: (t, bb, 0)),
            scratch_shapes=[
                pltpu.VMEM((Bb, Hp), jnp.float32),  # h carry
                pltpu.VMEM((Bb, Hp), jnp.float32),  # c carry
            ],
        ),
        compiler_params=pltpu.CompilerParams(
            # batch blocks are independent recurrences (megacore on v7x);
            # time is the sequential axis.
            dimension_semantics=("parallel", "arbitrary"),
            vmem_limit_bytes=vmem2),
    )(xg, m_p, Wh_p)

    return out[:S, :B, :H]


# ---------------------------------------------------------------------------
# Pure-JAX reference (direct transcription of the PyTorch forward).
# mxu_dtype / xg_dtype mirror the kernel's MXU and xg-storage precision for a
# tight check; defaults give the exact f32 PyTorch-equivalent math.
# ---------------------------------------------------------------------------
def lstm_reference(x, x_mask, Wx, Wh, b, mxu_dtype=jnp.float32,
                   xg_dtype=jnp.float32):
    S, B, D = x.shape
    H = Wh.shape[0]
    Wx_m = Wx.astype(mxu_dtype)
    Wh_m = Wh.astype(mxu_dtype)

    def step_fn(carry, inp):
        h, c = carry
        x_t, m_t = inp
        gx = (jnp.dot(x_t.astype(mxu_dtype), Wx_m,
                      preferred_element_type=jnp.float32) + b)
        gx = gx.astype(xg_dtype).astype(jnp.float32)
        gates = gx + jnp.dot(h.astype(mxu_dtype), Wh_m,
                             preferred_element_type=jnp.float32)
        u = jnp.tanh(gates[:, 0 * H:1 * H])
        i = jax.nn.sigmoid(gates[:, 1 * H:2 * H])
        f = jax.nn.sigmoid(gates[:, 2 * H:3 * H])
        o = jax.nn.sigmoid(gates[:, 3 * H:4 * H])
        c_new = i * u + f * c
        h_new = o * jnp.tanh(c_new)
        m = m_t[:, None]
        h2 = m * h_new + (1.0 - m) * h
        c2 = m * c_new + (1.0 - m) * c
        return (h2, c2), h2

    init = (jnp.zeros((B, H), jnp.float32), jnp.zeros((B, H), jnp.float32))
    _, hs = jax.lax.scan(step_fn, init, (x, x_mask))
    return hs


if __name__ == "__main__":
    # Small shapes: steps=8, batch=4, in_dim = mem_dim = 32.
    S, B, D = 8, 4, 32
    H = D

    Wx, Wh, b = make_params(D, H, seed=0)

    key = jax.random.PRNGKey(0)
    kx, km = jax.random.split(key)
    x = jax.random.normal(kx, (S, B, D), dtype=jnp.float32)
    # Mask: mostly ones with some zeros (padded positions), like variable-length seqs.
    x_mask = (jax.random.uniform(km, (S, B)) > 0.2).astype(jnp.float32)

    out = lstm_forward(x, x_mask, Wx, Wh, b, block_T=8)
    out = jax.block_until_ready(out)
    assert out.shape == (S, B, H)

    # Tight check against a reference using the same bf16-MXU / bf16-xg /
    # f32-accumulate math as the kernel.
    ref_bf16 = jax.block_until_ready(
        lstm_reference(x, x_mask, Wx, Wh, b,
                       mxu_dtype=jnp.bfloat16, xg_dtype=jnp.bfloat16))
    np.testing.assert_allclose(np.asarray(out), np.asarray(ref_bf16),
                               rtol=3e-3, atol=3e-3)

    # Loose check against the pure-f32 PyTorch-equivalent reference (bf16 drift).
    ref_f32 = jax.block_until_ready(lstm_reference(x, x_mask, Wx, Wh, b))
    np.testing.assert_allclose(np.asarray(out), np.asarray(ref_f32),
                               rtol=0.0, atol=1e-1)

    print("KERNEL_OK")
</pallas_src>

<mosaic_0001>
module attributes {stable_mosaic.version = 11 : i64} {
  func.func @_proj_kernel(%arg0: i32, %arg1: memref<128x128xf32, #tpu.memory_space<vmem>>, %arg2: memref<128x512xbf16, #tpu.memory_space<vmem>>, %arg3: memref<1x512xf32, #tpu.memory_space<vmem>>, %arg4: memref<128x512xbf16, #tpu.memory_space<vmem>>) attributes {dimension_semantics = [#tpu.dimension_semantics<parallel>], iteration_bounds = array<i64: 1>, scalar_prefetch = 0 : i64, scratch_operands = 0 : i64, tpu.core_type = #tpu.core_type<tc>, window_params = [{transform_indices = @transform_0, window_bounds = array<i64: 128, 128>}, {pipeline_mode = #tpu.pipeline_mode<synchronous>, transform_indices = @transform_1, window_bounds = array<i64: 128, 512>}, {pipeline_mode = #tpu.pipeline_mode<synchronous>, transform_indices = @transform_2, window_bounds = array<i64: 1, 512>}, {transform_indices = @transform_3, window_bounds = array<i64: 128, 512>}]} {
    %c0 = arith.constant 0 : index
    %c0_0 = arith.constant 0 : index
    %0 = vector.load %arg1[%c0, %c0_0] : memref<128x128xf32, #tpu.memory_space<vmem>>, vector<128x128xf32>
    %1 = arith.truncf %0 : vector<128x128xf32> to vector<128x128xbf16>
    %c0_1 = arith.constant 0 : index
    %c0_2 = arith.constant 0 : index
    %2 = vector.load %arg2[%c0_1, %c0_2] : memref<128x512xbf16, #tpu.memory_space<vmem>>, vector<128x512xbf16>
    %cst = arith.constant dense<0.000000e+00> : vector<128x512xf32>
    %3 = tpu.matmul %1, %2, %cst {dimension_numbers = #tpu.dot_dimension_numbers<[1], [0], [0], [1], [0, 0, 1, 1], [], []>} : vector<128x128xbf16>, vector<128x512xbf16>, vector<128x512xf32> -> vector<128x512xf32>
    %c0_3 = arith.constant 0 : index
    %c0_4 = arith.constant 0 : index
    %4 = vector.load %arg3[%c0_3, %c0_4] : memref<1x512xf32, #tpu.memory_space<vmem>>, vector<1x512xf32>
    %5 = vector.broadcast %4 : vector<1x512xf32> to vector<128x512xf32>
    %6 = arith.addf %3, %5 : vector<128x512xf32>
    %7 = arith.truncf %6 : vector<128x512xf32> to vector<128x512xbf16>
    %c0_5 = arith.constant 0 : index
    %c0_6 = arith.constant 0 : index
    %8 = vector.load %arg4[%c0_5, %c0_6] : memref<128x512xbf16, #tpu.memory_space<vmem>>, vector<128x512xbf16>
    tpu.vector_store %arg4[%c0_5, %c0_6], %7 {strides = array<i32>} : memref<128x512xbf16, #tpu.memory_space<vmem>>, vector<128x512xbf16>,
    return
  }
  func.func @transform_0(%arg0: i32) -> (i32, i32) {
    %c0_i32 = arith.constant 0 : i32
    %c0_i32_0 = arith.constant 0 : i32
    return %arg0, %c0_i32 : i32, i32
  }
  func.func @transform_1(%arg0: i32) -> (i32, i32) {
    %c0_i32 = arith.constant 0 : i32
    %c0_i32_0 = arith.constant 0 : i32
    %c0_i32_1 = arith.constant 0 : i32
    return %c0_i32, %c0_i32_0 : i32, i32
  }
  func.func @transform_2(%arg0: i32) -> (i32, i32) {
    %c0_i32 = arith.constant 0 : i32
    %c0_i32_0 = arith.constant 0 : i32
    %c0_i32_1 = arith.constant 0 : i32
    return %c0_i32, %c0_i32_0 : i32, i32
  }
  func.func @transform_3(%arg0: i32) -> (i32, i32) {
    %c0_i32 = arith.constant 0 : i32
    %c0_i32_0 = arith.constant 0 : i32
    return %arg0, %c0_i32 : i32, i32
  }
}

</mosaic_0001>

<bundles_post_ra>
// kernel: tpu_custom_call.1
= control target key start
LH: loop header
LB: loop body
LE: loop exit
PB: predicated region body
PF: predicated region fallthrough
CT: control target
= control target key end

     0   :  { %8 = vsyncpa [#allocation3], 0  ;;  %s1135_s0 = inlined_call_operand.hbm [shape: f32[128,128], index: 0, kind: input, shape index: {}]   ;;  %s1136_s1 = inlined_call_operand.hbm [shape: bf16[128,512], index: 1, kind: input, shape index: {}]   ;;  %s1137_s2 = inlined_call_operand.hbm [shape: f32[1,512], index: 2, kind: input, shape index: {}]   ;;  %s1138_s3 = inlined_call_operand.hbm [shape: bf16[128,512], index: 3, kind: output, shape index: {}]  }
   0x1   :  { %9 = vsyncpa [#allocation6], 0 }
   0x2   :  { %10 = vsyncpa [#allocation4], 0  ;;  %s1000_s12 = smov [#allocation5]  }
   0x3   :  { %s28_s13 = sshll.u32 %s1000_s12, 4  ;;  %s29_s13 = int_to_ptr.vmem [resolvable:$true] %s28_s13 }
   0x4   :  { %s922_s14 = scalar_lea.vmem %s29_s13, 4096  ;;  %p927_p1 = scmp.lt.s32.totalorder %s29_s13, %s29_s13 }
   0x5   :  { %p923_p0 = scmp.ne.s32.totalorder %s29_s13, %s922_s14  ;;  %p928_p2 = scmp.lt.s32.totalorder %s922_s14, %s922_s14 }
   0x7   :  { %p929_p3 = por %p928_p2, %p927_p1 }
   0x9   :  { %p930_p4 = pnand %p929_p3, %p923_p0 }
   0xb   :  { %933 = shalt.err (!%p930_p4)
}
   0xc   :  { %s1001_s15 = smov 256   ;;  %s1002_s16 = smov 16  }
   0xd   :  { %34 = dma.hbm_to_vmem [thread:$0]  %s1136_s1, 4096, %s29_s13, [#allocation6], %s1001_s15, %s1001_s15, %s1002_s16  }
   0xe   :  { %s1003_s19 = smov [#allocation2]  }
   0xf   :  { %s16_s20 = sshll.u32 %s1003_s19, 4  ;;  %s17_s20 = int_to_ptr.vmem [resolvable:$true] %s16_s20 }
  0x10   :  { %s942_s21 = scalar_lea.vmem %s17_s20, 2048  ;;  %p947_p6 = scmp.lt.s32.totalorder %s17_s20, %s17_s20 }
  0x11   :  { %p943_p5 = scmp.ne.s32.totalorder %s17_s20, %s942_s21  ;;  %p948_p7 = scmp.lt.s32.totalorder %s942_s21, %s942_s21 }
  0x13   :  { %p949_p8 = por %p948_p7, %p947_p6 }
  0x15   :  { %p950_p9 = pnand %p949_p8, %p943_p5 }
  0x17   :  { %953 = shalt.err (!%p950_p9)
}
  0x18   :  { %s1004_s22 = smov 128   ;;  %s1005_s23 = smov 8  }
  0x19   :  { %22 = dma.hbm_to_vmem [thread:$0]  %s1135_s0, 2048, %s17_s20, [#allocation3], %s1004_s22, %s1004_s22, %s1005_s23  }
  0x1a   :  { %s1006_s26 = smov [#allocation7]  }
  0x1b   :  { %s41_s27 = sshll.u32 %s1006_s26, 4  ;;  %s42_s27 = int_to_ptr.vmem [resolvable:$true] %s41_s27 }
  0x1c   :  { %s962_s1 = scalar_lea.vmem %s42_s27, 64  ;;  %p967_p11 = scmp.lt.s32.totalorder %s42_s27, %s42_s27 }
  0x1d   :  { %p963_p10 = scmp.ne.s32.totalorder %s42_s27, %s962_s1  ;;  %p968_p12 = scmp.lt.s32.totalorder %s962_s1, %s962_s1 }
  0x1f   :  { %p969_p13 = por %p968_p12, %p967_p11 }
  0x21   :  { %p970_p0 = pnand %p969_p13, %p963_p10 }
  0x23   :  { %973 = shalt.err (!%p970_p0)
}
  0x24   :  { %44 = dma.hbm_to_vmem [thread:$0]  %s1137_s2, 64, %s42_s27, [#allocation6]  }
  0x25   :  { %994 = dma.done.wait [#allocation3], 2048  }
  0x26   :  { %995 = vsyncadd [#allocation3], 4294965248 }
  0x27   :  { %996 = dma.done.wait [#allocation6], 4160  }
  0x28   :  { %997 = vsyncadd [#allocation6], 4294963136  ;;  %v1007_v0 = vmov 0   ;;  %v866_v1 = vld [vmem:[#allocation5 + $0xe4] ss:$16 sps:$4 sm:$0xff]   ;;  %v56_v34 = vld [vmem:[#allocation2 + $0x8] sm:$0xff]  ;;  %v113_v57 = vlaneseq }
  0x29   :  { %325 = vmatprep.mubr.bf16.mxu0 %v1007_v0  ;;  %438 = vmatprep.mubr.bf16.mxu1 %v1007_v0  ;;  %v868_v2 = vld [vmem:[#allocation5 + $0xec] ss:$16 sps:$4 sm:$0xff]   ;;  %v870_v3 = vld [vmem:[#allocation5 + $0xe0] ss:$16 sps:$4 sm:$0xff]   ;;  %v871_v4 = vld [vmem:[#allocation5 + $0xe8] ss:$16 sps:$4 sm:$0xff]  }
  0x2a   :  { %293 = vmatprep.subr.bf16.mxu0 %v866_v1  ;;  %406 = vmatprep.subr.bf16.mxu1 %v868_v2  ;;  %v872_v5 = vld [vmem:[#allocation5 + $0xc4] ss:$16 sps:$4 sm:$0xff]   ;;  %v874_v6 = vld [vmem:[#allocation5 + $0xcc] ss:$16 sps:$4 sm:$0xff]   ;;  %v876_v7 = vld [vmem:[#allocation5 + $0xc0] ss:$16 sps:$4 sm:$0xff]  }
  0x2b   :  { %294 = vmatpush1.bf16.msra.mxu0 %v870_v3  ;;  %407 = vmatpush1.bf16.msra.mxu1 %v871_v4  ;;  %v877_v8 = vld [vmem:[#allocation5 + $0xc8] ss:$16 sps:$4 sm:$0xff]   ;;  %v878_v9 = vld [vmem:[#allocation5 + $0xa4] ss:$16 sps:$4 sm:$0xff]   ;;  %v880_v10 = vld [vmem:[#allocation5 + $0xac] ss:$16 sps:$4 sm:$0xff]  }
  0x2c   :  { %295 = vmatprep.subr.bf16.mxu0 %v872_v5  ;;  %408 = vmatprep.subr.bf16.mxu1 %v874_v6  ;;  %v882_v11 = vld [vmem:[#allocation5 + $0xa0] ss:$16 sps:$4 sm:$0xff]   ;;  %v883_v12 = vld [vmem:[#allocation5 + $0xa8] ss:$16 sps:$4 sm:$0xff]   ;;  %v884_v13 = vld [vmem:[#allocation5 + $0x84] ss:$16 sps:$4 sm:$0xff]  }
  0x2d   :  { %v886_v14 = vld [vmem:[#allocation5 + $0x8c] ss:$16 sps:$4 sm:$0xff]   ;;  %v888_v15 = vld [vmem:[#allocation5 + $0x80] ss:$16 sps:$4 sm:$0xff]   ;;  %v889_v16 = vld [vmem:[#allocation5 + $0x88] ss:$16 sps:$4 sm:$0xff]  }
  0x2e   :  { %v890_v17 = vld [vmem:[#allocation5 + $0x64] ss:$16 sps:$4 sm:$0xff]   ;;  %v892_v18 = vld [vmem:[#allocation5 + $0x6c] ss:$16 sps:$4 sm:$0xff]   ;;  %v894_v19 = vld [vmem:[#allocation5 + $0x60] ss:$16 sps:$4 sm:$0xff]  }
  0x2f   :  { %296 = vmatpush1.bf16.msra.mxu0 %v876_v7  ;;  %409 = vmatpush1.bf16.msra.mxu1 %v877_v8  ;;  %v895_v20 = vld [vmem:[#allocation5 + $0x68] ss:$16 sps:$4 sm:$0xff]   ;;  %v896_v21 = vld [vmem:[#allocation5 + $0x44] ss:$16 sps:$4 sm:$0xff]   ;;  %v898_v22 = vld [vmem:[#allocation5 + $0x4c] ss:$16 sps:$4 sm:$0xff]  }
  0x30   :  { %297 = vmatprep.subr.bf16.mxu0 %v878_v9  ;;  %410 = vmatprep.subr.bf16.mxu1 %v880_v10  ;;  %v900_v23 = vld [vmem:[#allocation5 + $0x40] ss:$16 sps:$4 sm:$0xff]   ;;  %v901_v24 = vld [vmem:[#allocation5 + $0x48] ss:$16 sps:$4 sm:$0xff]   ;;  %v902_v25 = vld [vmem:[#allocation5 + $0x24] ss:$16 sps:$4 sm:$0xff]  }
  0x31   :  { %v904_v26 = vld [vmem:[#allocation5 + $0x2c] ss:$16 sps:$4 sm:$0xff]   ;;  %v906_v27 = vld [vmem:[#allocation5 + $0x20] ss:$16 sps:$4 sm:$0xff]   ;;  %v907_v28 = vld [vmem:[#allocation5 + $0x28] ss:$16 sps:$4 sm:$0xff]  }
  0x32   :  { %v908_v29 = vld [vmem:[#allocation5 + $0x4] ss:$16 sps:$4 sm:$0xff]   ;;  %v910_v30 = vld [vmem:[#allocation5 + $0xc] ss:$16 sps:$4 sm:$0xff]   ;;  %v912_v31 = vld [vmem:[#allocation5] ss:$16 sps:$4 sm:$0xff]  }
  0x33   :  { %298 = vmatpush1.bf16.msra.mxu0 %v882_v11  ;;  %411 = vmatpush1.bf16.msra.mxu1 %v883_v12  ;;  %v913_v32 = vld [vmem:[#allocation5 + $0x8] ss:$16 sps:$4 sm:$0xff]   ;;  %v55_v33 = vld [vmem:[#allocation2] sm:$0xff]  ;;  %v57_v36 = vld [vmem:[#allocation2 + $0x10] sm:$0xff]  ;;  %v114_v58 = vshrl.u32 %v113_v57, 7  ;;  %s1008_s0 = smov [#allocation8]  }
  0x34   :  { %299 = vmatprep.subr.bf16.mxu0 %v884_v13  ;;  %412 = vmatprep.subr.bf16.mxu1 %v886_v14  ;;  %v71_v35 = vpack.c.bf16 %v56_v34, %v55_v33  ;;  %v58_v37 = vld [vmem:[#allocation2 + $0x18] sm:$0xff]  ;;  %v59_v39 = vld [vmem:[#allocation2 + $0x20] sm:$0xff]  ;;  %v60_v40 = vld [vmem:[#allocation2 + $0x28] sm:$0xff]  ;;  %s748_s2 = sshll.u32 %s1008_s0, 4  ;;  %s749_s2 = int_to_ptr.vmem [resolvable:$true] %s748_s2 }
  0x35   :  { %v72_v38 = vpack.c.bf16 %v58_v37, %v57_v36  ;;  %v73_v41 = vpack.c.bf16 %v60_v40, %v59_v39  ;;  %v61_v42 = vld [vmem:[#allocation2 + $0x30] sm:$0xff]  ;;  %v62_v43 = vld [vmem:[#allocation2 + $0x38] sm:$0xff]  ;;  %v63_v45 = vld [vmem:[#allocation2 + $0x40] sm:$0xff]  ;;  %v115_v59 = vsub.s32 0, %v114_v58  ;;  %v123_v60 = vsub.s32 2, %v114_v58  ;;  %s974_s30 = scalar_lea.vmem %s749_s2, 4096  ;;  %p979_p2 = scmp.lt.s32.totalorder %s749_s2, %s749_s2 }
  0x36   :  { %v74_v44 = vpack.c.bf16 %v62_v43, %v61_v42  ;;  %v64_v46 = vld [vmem:[#allocation2 + $0x48] sm:$0xff]  ;;  %v65_v48 = vld [vmem:[#allocation2 + $0x50] sm:$0xff]  ;;  %v66_v49 = vld [vmem:[#allocation2 + $0x58] sm:$0xff]  ;;  %v119_v61 = vsub.s32 1, %v114_v58  ;;  %v127_v62 = vsub.s32 3, %v114_v58  ;;  %p975_p1 = scmp.ne.s32.totalorder %s749_s2, %s974_s30  ;;  %p980_p3 = scmp.lt.s32.totalorder %s974_s30, %s974_s30 }
  0x37   :  { %300 = vmatpush1.bf16.msra.mxu0 %v888_v15  ;;  %413 = vmatpush1.bf16.msra.mxu1 %v889_v16  ;;  %v75_v47 = vpack.c.bf16 %v64_v46, %v63_v45  ;;  %v76_v50 = vpack.c.bf16 %v66_v49, %v65_v48  ;;  %v67_v51 = vld [vmem:[#allocation2 + $0x60] sm:$0xff]  ;;  %v68_v52 = vld [vmem:[#allocation2 + $0x68] sm:$0xff]  ;;  %v69_v54 = vld [vmem:[#allocation2 + $0x70] sm:$0xff] }
  0x38   :  { %301 = vmatprep.subr.bf16.mxu0 %v890_v17  ;;  %414 = vmatprep.subr.bf16.mxu1 %v892_v18  ;;  %v77_v53 = vpack.c.bf16 %v68_v52, %v67_v51  ;;  %v70_v55 = vld [vmem:[#allocation2 + $0x78] sm:$0xff]  ;;  %v111_v63 = vld [vmem:[#allocation7] sm:$0xf]  ;;  %p981_p4 = por %p980_p3, %p979_p2 }
  0x39   :  { %v78_v56 = vpack.c.bf16 %v70_v55, %v69_v54  ;;  %v1057_v1 = vrot.slane %v111_v63, %v115_v59  ;;  %v1059_v2 = vrot.slane %v111_v63, %v123_v60  ;;  %v1061_v3 = vrot.slane %v111_v63, %v119_v61 }
  0x3a   :  { %v1063_v4 = vrot.slane %v111_v63, %v127_v62  ;;  %p982_p5 = pnand %p981_p4, %p975_p1 }
  0x3b   :  { %302 = vmatpush1.bf16.msra.mxu0 %v894_v19  ;;  %415 = vmatpush1.bf16.msra.mxu1 %v895_v20 }
  0x3c   :  { %303 = vmatprep.subr.bf16.mxu0 %v896_v21  ;;  %416 = vmatprep.subr.bf16.mxu1 %v898_v22 }
  0x3f   :  { %304 = vmatpush1.bf16.msra.mxu0 %v900_v23  ;;  %417 = vmatpush1.bf16.msra.mxu1 %v901_v24 }
  0x40   :  { %305 = vmatprep.subr.bf16.mxu0 %v902_v25  ;;  %418 = vmatprep.subr.bf16.mxu1 %v904_v26 }
  0x43   :  { %306 = vmatpush1.bf16.msra.mxu0 %v906_v27  ;;  %419 = vmatpush1.bf16.msra.mxu1 %v907_v28 }
  0x44   :  { %307 = vmatprep.subr.bf16.mxu0 %v908_v29  ;;  %420 = vmatprep.subr.bf16.mxu1 %v910_v30 }
  0x47   :  { %308 = vmatpush1.bf16.msra.mxu0 %v912_v31  ;;  %421 = vmatpush1.bf16.msra.mxu1 %v913_v32 }
  0x4a   :  { %326 = vmatmul.mubr.bf16.vlgmr.msra.gmra.mxu0 %v71_v35  ;;  %439 = vmatmul.mubr.bf16.vlgmr.msra.gmra.mxu1 %v71_v35 }
  0x4b   :  { %335 = vmatprep.mubr.bf16.mxu0 %v1007_v0  ;;  %448 = vmatprep.mubr.bf16.mxu1 %v1007_v0 }
  0x52   :  { %336 = vmatmul.mubr.bf16.gmra.mxu0 %v72_v38  ;;  %449 = vmatmul.mubr.bf16.gmra.mxu1 %v72_v38 }
  0x53   :  { %345 = vmatprep.mubr.bf16.mxu0 %v1007_v0  ;;  %458 = vmatprep.mubr.bf16.mxu1 %v1007_v0 }
  0x5a   :  { %346 = vmatmul.mubr.bf16.gmra.mxu0 %v73_v41  ;;  %459 = vmatmul.mubr.bf16.gmra.mxu1 %v73_v41 }
  0x5b   :  { %355 = vmatprep.mubr.bf16.mxu0 %v1007_v0  ;;  %468 = vmatprep.mubr.bf16.mxu1 %v1007_v0 }
  0x62   :  { %356 = vmatmul.mubr.bf16.gmra.mxu0 %v74_v44  ;;  %469 = vmatmul.mubr.bf16.gmra.mxu1 %v74_v44 }
  0x63   :  { %365 = vmatprep.mubr.bf16.mxu0 %v1007_v0  ;;  %478 = vmatprep.mubr.bf16.mxu1 %v1007_v0 }
  0x6a   :  { %366 = vmatmul.mubr.bf16.gmra.mxu0 %v75_v47  ;;  %479 = vmatmul.mubr.bf16.gmra.mxu1 %v75_v47 }
  0x6b   :  { %375 = vmatprep.mubr.bf16.mxu0 %v1007_v0  ;;  %488 = vmatprep.mubr.bf16.mxu1 %v1007_v0 }
  0x72   :  { %376 = vmatmul.mubr.bf16.gmra.mxu0 %v76_v50  ;;  %489 = vmatmul.mubr.bf16.gmra.mxu1 %v76_v50 }
  0x73   :  { %385 = vmatprep.mubr.bf16.mxu0 %v1007_v0  ;;  %498 = vmatprep.mubr.bf16.mxu1 %v1007_v0 }
  0x7a   :  { %386 = vmatmul.mubr.bf16.gmra.mxu0 %v77_v53  ;;  %499 = vmatmul.mubr.bf16.gmra.mxu1 %v77_v53 }
  0x7b   :  { %395 = vmatprep.mubr.bf16.mxu0 %v1007_v0  ;;  %508 = vmatprep.mubr.bf16.mxu1 %v1007_v0 }
  0x82   :  { %396 = vmatmul.mubr.bf16.gmra.mxu0 %v78_v56  ;;  %509 = vmatmul.mubr.bf16.gmra.mxu1 %v78_v56 }
 0x10a   :  { %v327_v0 = vpop.f32.mrf.mxu0  ;;  %v440_v5 = vpop.f32.mrf.mxu1 }
 0x10b   :  { %v328_v8 = vadd.f32 %v327_v0, %v1057_v1  ;;  %v441_v9 = vadd.f32 %v440_v5, %v1059_v2 }
 0x10c   :  { %v329_v6 = vpop.f32.mrf.mxu0  ;;  %v442_v7 = vpop.f32.mrf.mxu1 }
 0x10d   :  { %v330_v10 = vadd.f32 %v329_v6, %v1061_v3  ;;  %v443_v11 = vadd.f32 %v442_v7, %v1063_v4 }
 0x10e   :  { %v331_v12 = vpop.f32.mrf.mxu0  ;;  %v444_v13 = vpop.f32.mrf.mxu1 }
 0x10f   :  { %v825_v14 = vpack.c.bf16 %v330_v10, %v328_v8  ;;  %v826_v15 = vpack.c.bf16 %v443_v11, %v441_v9  ;;  %v332_v18 = vadd.f32 %v331_v12, %v1057_v1  ;;  %v445_v19 = vadd.f32 %v444_v13, %v1059_v2 }
 0x110   :  { %v333_v16 = vpop.f32.mrf.mxu0  ;;  %v446_v17 = vpop.f32.mrf.mxu1 }
 0x111   :  { %711 = vst [vmem:[#allocation8] sm:$0xff] %v825_v14  ;;  %712 = vst [vmem:[#allocation8 + $0x8] sm:$0xff] %v826_v15  ;;  %v334_v20 = vadd.f32 %v333_v16, %v1061_v3  ;;  %v447_v21 = vadd.f32 %v446_v17, %v1063_v4 }
 0x112   :  { %v337_v22 = vpop.f32.mrf.mxu0  ;;  %v450_v23 = vpop.f32.mrf.mxu1 }
 0x113   :  { %v827_v24 = vpack.c.bf16 %v334_v20, %v332_v18  ;;  %v828_v25 = vpack.c.bf16 %v447_v21, %v445_v19  ;;  %v338_v28 = vadd.f32 %v337_v22, %v1057_v1  ;;  %v451_v29 = vadd.f32 %v450_v23, %v1059_v2 }
 0x114   :  { %v339_v26 = vpop.f32.mrf.mxu0  ;;  %v452_v27 = vpop.f32.mrf.mxu1 }
 0x115   :  { %713 = vst [vmem:[#allocation8 + $0x10] sm:$0xff] %v827_v24  ;;  %714 = vst [vmem:[#allocation8 + $0x18] sm:$0xff] %v828_v25  ;;  %v340_v30 = vadd.f32 %v339_v26, %v1061_v3  ;;  %v453_v31 = vadd.f32 %v452_v27, %v1063_v4 }
 0x116   :  { %v341_v32 = vpop.f32.mrf.mxu0  ;;  %v454_v33 = vpop.f32.mrf.mxu1 }
 0x117   :  { %v829_v34 = vpack.c.bf16 %v340_v30, %v338_v28  ;;  %v830_v35 = vpack.c.bf16 %v453_v31, %v451_v29  ;;  %v342_v38 = vadd.f32 %v341_v32, %v1057_v1  ;;  %v455_v39 = vadd.f32 %v454_v33, %v1059_v2 }
 0x118   :  { %v343_v36 = vpop.f32.mrf.mxu0  ;;  %v456_v37 = vpop.f32.mrf.mxu1 }
 0x119   :  { %715 = vst [vmem:[#allocation8 + $0x20] sm:$0xff] %v829_v34  ;;  %716 = vst [vmem:[#allocation8 + $0x28] sm:$0xff] %v830_v35  ;;  %v344_v40 = vadd.f32 %v343_v36, %v1061_v3  ;;  %v457_v41 = vadd.f32 %v456_v37, %v1063_v4 }
 0x11a   :  { %v347_v42 = vpop.f32.mrf.mxu0  ;;  %v460_v43 = vpop.f32.mrf.mxu1 }
 0x11b   :  { %v831_v44 = vpack.c.bf16 %v344_v40, %v342_v38  ;;  %v832_v45 = vpack.c.bf16 %v457_v41, %v455_v39  ;;  %v348_v48 = vadd.f32 %v347_v42, %v1057_v1  ;;  %v461_v49 = vadd.f32 %v460_v43, %v1059_v2 }
 0x11c   :  { %v349_v46 = vpop.f32.mrf.mxu0  ;;  %v462_v47 = vpop.f32.mrf.mxu1 }
 0x11d   :  { %717 = vst [vmem:[#allocation8 + $0x30] sm:$0xff] %v831_v44  ;;  %718 = vst [vmem:[#allocation8 + $0x38] sm:$0xff] %v832_v45  ;;  %v350_v50 = vadd.f32 %v349_v46, %v1061_v3  ;;  %v463_v51 = vadd.f32 %v462_v47, %v1063_v4 }
 0x11e   :  { %v351_v52 = vpop.f32.mrf.mxu0  ;;  %v464_v53 = vpop.f32.mrf.mxu1 }
 0x11f   :  { %v833_v54 = vpack.c.bf16 %v350_v50, %v348_v48  ;;  %v834_v55 = vpack.c.bf16 %v463_v51, %v461_v49  ;;  %v352_v58 = vadd.f32 %v351_v52, %v1057_v1  ;;  %v465_v59 = vadd.f32 %v464_v53, %v1059_v2 }
 0x120   :  { %v353_v56 = vpop.f32.mrf.mxu0  ;;  %v466_v57 = vpop.f32.mrf.mxu1 }
 0x121   :  { %719 = vst [vmem:[#allocation8 + $0x40] sm:$0xff] %v833_v54  ;;  %720 = vst [vmem:[#allocation8 + $0x48] sm:$0xff] %v834_v55  ;;  %v354_v60 = vadd.f32 %v353_v56, %v1061_v3  ;;  %v467_v61 = vadd.f32 %v466_v57, %v1063_v4 }
 0x122   :  { %v357_v62 = vpop.f32.mrf.mxu0  ;;  %v470_v63 = vpop.f32.mrf.mxu1 }
 0x123   :  { %v835_v0 = vpack.c.bf16 %v354_v60, %v352_v58  ;;  %v836_v5 = vpack.c.bf16 %v467_v61, %v465_v59  ;;  %v358_v8 = vadd.f32 %v357_v62, %v1057_v1  ;;  %v471_v9 = vadd.f32 %v470_v63, %v1059_v2 }
 0x124   :  { %v359_v6 = vpop.f32.mrf.mxu0  ;;  %v472_v7 = vpop.f32.mrf.mxu1 }
 0x125   :  { %721 = vst [vmem:[#allocation8 + $0x50] sm:$0xff] %v835_v0  ;;  %722 = vst [vmem:[#allocation8 + $0x58] sm:$0xff] %v836_v5  ;;  %v360_v10 = vadd.f32 %v359_v6, %v1061_v3  ;;  %v473_v11 = vadd.f32 %v472_v7, %v1063_v4 }
 0x126   :  { %v361_v12 = vpop.f32.mrf.mxu0  ;;  %v474_v13 = vpop.f32.mrf.mxu1 }
 0x127   :  { %v837_v14 = vpack.c.bf16 %v360_v10, %v358_v8  ;;  %v838_v15 = vpack.c.bf16 %v473_v11, %v471_v9  ;;  %v362_v18 = vadd.f32 %v361_v12, %v1057_v1  ;;  %v475_v19 = vadd.f32 %v474_v13, %v1059_v2 }
 0x128   :  { %v363_v16 = vpop.f32.mrf.mxu0  ;;  %v476_v17 = vpop.f32.mrf.mxu1 }
 0x129   :  { %723 = vst [vmem:[#allocation8 + $0x60] sm:$0xff] %v837_v14  ;;  %724 = vst [vmem:[#allocation8 + $0x68] sm:$0xff] %v838_v15  ;;  %v364_v20 = vadd.f32 %v363_v16, %v1061_v3  ;;  %v477_v21 = vadd.f32 %v476_v17, %v1063_v4 }
 0x12a   :  { %v367_v22 = vpop.f32.mrf.mxu0  ;;  %v480_v23 = vpop.f32.mrf.mxu1 }
 0x12b   :  { %v839_v24 = vpack.c.bf16 %v364_v20, %v362_v18  ;;  %v840_v25 = vpack.c.bf16 %v477_v21, %v475_v19  ;;  %v368_v28 = vadd.f32 %v367_v22, %v1057_v1  ;;  %v481_v29 = vadd.f32 %v480_v23, %v1059_v2 }
 0x12c   :  { %v369_v26 = vpop.f32.mrf.mxu0  ;;  %v482_v27 = vpop.f32.mrf.mxu1 }
 0x12d   :  { %725 = vst [vmem:[#allocation8 + $0x70] sm:$0xff] %v839_v24  ;;  %726 = vst [vmem:[#allocation8 + $0x78] sm:$0xff] %v840_v25  ;;  %v370_v30 = vadd.f32 %v369_v26, %v1061_v3  ;;  %v483_v31 = vadd.f32 %v482_v27, %v1063_v4 }
 0x12e   :  { %v371_v32 = vpop.f32.mrf.mxu0  ;;  %v484_v33 = vpop.f32.mrf.mxu1 }
 0x12f   :  { %v841_v34 = vpack.c.bf16 %v370_v30, %v368_v28  ;;  %v842_v35 = vpack.c.bf16 %v483_v31, %v481_v29  ;;  %v372_v38 = vadd.f32 %v371_v32, %v1057_v1  ;;  %v485_v39 = vadd.f32 %v484_v33, %v1059_v2 }
 0x130   :  { %v373_v36 = vpop.f32.mrf.mxu0  ;;  %v486_v37 = vpop.f32.mrf.mxu1 }
 0x131   :  { %727 = vst [vmem:[#allocation8 + $0x80] sm:$0xff] %v841_v34  ;;  %728 = vst [vmem:[#allocation8 + $0x88] sm:$0xff] %v842_v35  ;;  %v374_v40 = vadd.f32 %v373_v36, %v1061_v3  ;;  %v487_v41 = vadd.f32 %v486_v37, %v1063_v4 }
 0x132   :  { %v377_v42 = vpop.f32.mrf.mxu0  ;;  %v490_v43 = vpop.f32.mrf.mxu1 }
 0x133   :  { %v843_v44 = vpack.c.bf16 %v374_v40, %v372_v38  ;;  %v844_v45 = vpack.c.bf16 %v487_v41, %v485_v39  ;;  %v378_v48 = vadd.f32 %v377_v42, %v1057_v1  ;;  %v491_v49 = vadd.f32 %v490_v43, %v1059_v2 }
 0x134   :  { %v379_v46 = vpop.f32.mrf.mxu0  ;;  %v492_v47 = vpop.f32.mrf.mxu1 }
 0x135   :  { %729 = vst [vmem:[#allocation8 + $0x90] sm:$0xff] %v843_v44  ;;  %730 = vst [vmem:[#allocation8 + $0x98] sm:$0xff] %v844_v45  ;;  %v380_v50 = vadd.f32 %v379_v46, %v1061_v3  ;;  %v493_v51 = vadd.f32 %v492_v47, %v1063_v4 }
 0x136   :  { %v381_v52 = vpop.f32.mrf.mxu0  ;;  %v494_v53 = vpop.f32.mrf.mxu1 }
 0x137   :  { %v845_v54 = vpack.c.bf16 %v380_v50, %v378_v48  ;;  %v846_v55 = vpack.c.bf16 %v493_v51, %v491_v49  ;;  %v382_v58 = vadd.f32 %v381_v52, %v1057_v1  ;;  %v495_v59 = vadd.f32 %v494_v53, %v1059_v2 }
 0x138   :  { %v383_v56 = vpop.f32.mrf.mxu0  ;;  %v496_v57 = vpop.f32.mrf.mxu1 }
 0x139   :  { %731 = vst [vmem:[#allocation8 + $0xa0] sm:$0xff] %v845_v54  ;;  %732 = vst [vmem:[#allocation8 + $0xa8] sm:$0xff] %v846_v55  ;;  %v384_v60 = vadd.f32 %v383_v56, %v1061_v3  ;;  %v497_v61 = vadd.f32 %v496_v57, %v1063_v4 }
 0x13a   :  { %v387_v62 = vpop.f32.mrf.mxu0  ;;  %v500_v63 = vpop.f32.mrf.mxu1 }
 0x13b   :  { %v847_v0 = vpack.c.bf16 %v384_v60, %v382_v58  ;;  %v848_v5 = vpack.c.bf16 %v497_v61, %v495_v59  ;;  %v388_v8 = vadd.f32 %v387_v62, %v1057_v1  ;;  %v501_v9 = vadd.f32 %v500_v63, %v1059_v2 }
 0x13c   :  { %v389_v6 = vpop.f32.mrf.mxu0  ;;  %v502_v7 = vpop.f32.mrf.mxu1 }
 0x13d   :  { %733 = vst [vmem:[#allocation8 + $0xb0] sm:$0xff] %v847_v0  ;;  %734 = vst [vmem:[#allocation8 + $0xb8] sm:$0xff] %v848_v5  ;;  %v390_v10 = vadd.f32 %v389_v6, %v1061_v3  ;;  %v503_v11 = vadd.f32 %v502_v7, %v1063_v4 }
 0x13e   :  { %v391_v12 = vpop.f32.mrf.mxu0  ;;  %v504_v13 = vpop.f32.mrf.mxu1 }
 0x13f   :  { %v849_v14 = vpack.c.bf16 %v390_v10, %v388_v8  ;;  %v850_v15 = vpack.c.bf16 %v503_v11, %v501_v9  ;;  %v392_v18 = vadd.f32 %v391_v12, %v1057_v1  ;;  %v505_v19 = vadd.f32 %v504_v13, %v1059_v2 }
 0x140   :  { %v393_v16 = vpop.f32.mrf.mxu0  ;;  %v506_v17 = vpop.f32.mrf.mxu1 }
 0x141   :  { %735 = vst [vmem:[#allocation8 + $0xc0] sm:$0xff] %v849_v14  ;;  %736 = vst [vmem:[#allocation8 + $0xc8] sm:$0xff] %v850_v15  ;;  %v394_v20 = vadd.f32 %v393_v16, %v1061_v3  ;;  %v507_v21 = vadd.f32 %v506_v17, %v1063_v4 }
 0x142   :  { %v397_v22 = vpop.f32.mrf.mxu0  ;;  %v510_v23 = vpop.f32.mrf.mxu1 }
 0x143   :  { %v851_v24 = vpack.c.bf16 %v394_v20, %v392_v18  ;;  %v852_v25 = vpack.c.bf16 %v507_v21, %v505_v19  ;;  %v398_v28 = vadd.f32 %v397_v22, %v1057_v1  ;;  %v511_v29 = vadd.f32 %v510_v23, %v1059_v2 }
 0x144   :  { %v399_v26 = vpop.f32.mrf.mxu0  ;;  %v512_v27 = vpop.f32.mrf.mxu1 }
 0x145   :  { %737 = vst [vmem:[#allocation8 + $0xd0] sm:$0xff] %v851_v24  ;;  %738 = vst [vmem:[#allocation8 + $0xd8] sm:$0xff] %v852_v25  ;;  %v400_v30 = vadd.f32 %v399_v26, %v1061_v3  ;;  %v513_v31 = vadd.f32 %v512_v27, %v1063_v4 }
 0x146   :  { %v401_v32 = vpop.f32.mrf.mxu0  ;;  %v514_v33 = vpop.f32.mrf.mxu1 }
 0x147   :  { %v853_v34 = vpack.c.bf16 %v400_v30, %v398_v28  ;;  %v854_v35 = vpack.c.bf16 %v513_v31, %v511_v29  ;;  %v402_v38 = vadd.f32 %v401_v32, %v1057_v1  ;;  %v515_v39 = vadd.f32 %v514_v33, %v1059_v2 }
 0x148   :  { %v403_v36 = vpop.f32.mrf.mxu0  ;;  %v516_v37 = vpop.f32.mrf.mxu1 }
 0x149   :  { %739 = vst [vmem:[#allocation8 + $0xe0] sm:$0xff] %v853_v34  ;;  %740 = vst [vmem:[#allocation8 + $0xe8] sm:$0xff] %v854_v35  ;;  %v404_v40 = vadd.f32 %v403_v36, %v1061_v3  ;;  %v517_v41 = vadd.f32 %v516_v37, %v1063_v4 }
 0x14b   :  { %v855_v42 = vpack.c.bf16 %v404_v40, %v402_v38  ;;  %v856_v43 = vpack.c.bf16 %v517_v41, %v515_v39 }
 0x14d   :  { %741 = vst [vmem:[#allocation8 + $0xf0] sm:$0xff] %v855_v42  ;;  %742 = vst [vmem:[#allocation8 + $0xf8] sm:$0xff] %v856_v43 }
 0x14e   :  { %985 = shalt.err (!%p982_p5)
}
 0x14f   :  { %754 = dma.vmem_to_hbm [thread:$0]  %s749_s2, 4096, %s1138_s3, [#allocation4], %s1001_s15, %s1001_s15, %s1002_s16  }
 0x150   :  { %998 = dma.done.wait [#allocation4], 4096  }
 0x151   :  { %999 = vsyncadd [#allocation4], 4294963200 }
 0x152   :  { %758 = vsyncpa [#allocation3], 1 }
 0x153   :  { %759 = vsyncpa [#allocation6], 1 }
 0x154   :  { %760 = vsyncpa [#allocation4], 1 }

</bundles_post_ra>
